<compile_context>
chip_gen: v6e
topology: v6e:2x2x1
jax: 0.10.0
libtpu: 0.0.40
codegen_flags: <defaults>
</compile_context>

<pallas_src>
import jax
import jax.numpy as jnp
from jax.experimental import pallas as pl
from jax.experimental.pallas import tpu as pltpu


# ---------------------------------------------------------------------------
# Kernels
# ---------------------------------------------------------------------------

def ffn_resident_kernel(x_ref, w1_ref, b1_ref, w2_ref, b2_ref, o_ref):
    # x_ref: (tm, E)   w1_ref: (E, H)  b1_ref: (1, H)
    # w2_ref: (H, E)   b2_ref: (1, E)  o_ref: (tm, E)
    # Weights use constant index maps -> DMA'd once, resident across all i.
    x = x_ref[...]
    h = jnp.dot(x, w1_ref[...], preferred_element_type=jnp.float32)
    h = jnp.maximum(h + b1_ref[...], 0.0)
    y = jnp.dot(h.astype(w2_ref.dtype), w2_ref[...],
                preferred_element_type=jnp.float32)
    o_ref[...] = (y + b2_ref[...]).astype(o_ref.dtype)


def ffn_stream_kernel(x_ref, w1_ref, b1_ref, w2_ref, b2_ref, o_ref, acc_ref):
    # x_ref: (tm, E)   w1_ref: (E, th)  b1_ref: (1, th)
    # w2_ref: (th, E)  b2_ref: (1, E)   o_ref: (tm, E)
    # acc_ref: (tm, E) f32 scratch, persists across the hidden (k) axis.
    k = pl.program_id(1)

    x = x_ref[...]
    h = jnp.dot(x, w1_ref[...], preferred_element_type=jnp.float32)
    h = jnp.maximum(h + b1_ref[...], 0.0)
    partial = jnp.dot(h.astype(w2_ref.dtype), w2_ref[...],
                      preferred_element_type=jnp.float32)

    # Direct write on the first hidden step (no zero-init store + read-back).
    @pl.when(k == 0)
    def _():
        acc_ref[...] = partial

    @pl.when(k > 0)
    def _():
        acc_ref[...] += partial

    @pl.when(k == pl.num_programs(1) - 1)
    def _():
        o_ref[...] = (acc_ref[...] + b2_ref[...]).astype(o_ref.dtype)


# ---------------------------------------------------------------------------
# Tiling / budgeting helpers
# ---------------------------------------------------------------------------

def _round_up(x, m):
    return ((x + m - 1) // m) * m


def _vmem_budget_bytes():
    """Usable VMEM budget with headroom, never above the chip's physical VMEM
    (v7x has only 64 MiB; v5e/v6e have 128 MiB)."""
    cap = 64 << 20  # conservative default = smallest generation (v7x)
    try:
        info = pltpu.get_tpu_info()
        cap = int(getattr(info, "vmem_capacity_bytes", cap)) or cap
    except Exception:
        pass
    return max(int(min(cap - (8 << 20), cap * 0.8)), 16 << 20)


def _pick_hidden_tile(H, cap=512):
    """Largest divisor of H <= cap that is a multiple of 256 (v6e/v7x MXU
    width); falls back to a multiple of 128 (v5e MXU), then to H itself."""
    for step in (256, 128):
        best = None
        for th in range(step, min(H, cap) + 1, step):
            if H % th == 0:
                best = th
        if best is not None:
            return best
    return H


def _pick_row_tile(M, cap):
    """Row tile: multiple of 8, <= cap, preferring a divisor of M (avoids the
    jnp.pad copy); keeps >= 2 row tiles so both v7x TensorCores get work."""
    if M >= 16:
        cap = min(cap, _round_up((M + 1) // 2, 8))
    cap = min(cap, _round_up(M, 8))
    cap = max(8, (cap // 8) * 8)
    best = None
    for tm in range(8, cap + 1, 8):
        if M % tm == 0:
            best = tm
    return best if best is not None else cap


def _resident_vmem_bytes(tm, E, H, bpe):
    # Conservative: count double buffers even for the constant-index weights.
    return (2 * (E * H + H + H * E + E) * bpe   # W1, b1, W2, b2
            + 2 * tm * E * bpe                  # x tiles
            + 2 * tm * E * bpe                  # out tiles
            + tm * H * (4 + bpe))               # (tm, H) f32 intermediate + cast


def _stream_vmem_bytes(tm, th, E, bpe):
    return (2 * tm * E * bpe                         # x tiles
            + 2 * (E * th + th + th * E + E) * bpe   # W1/b1/W2/b2 tiles
            + 2 * tm * E * bpe                       # out tiles
            + tm * E * 4                             # f32 accumulator scratch
            + tm * th * (4 + bpe))                   # (tm, th) intermediate + cast


# ---------------------------------------------------------------------------
# Wrapper
# ---------------------------------------------------------------------------

def feed_forward(x, w1, b1, w2, b2, *, tm=None, th=None, weight_resident=None):
    """x: (B, T, E). Returns (B, T, E). Eval-mode FFN (dropout == identity).

    Production note: pass bf16 x/weights for ~2x (f32 accumulation is kept
    inside the kernel via preferred_element_type), and keep E a multiple of
    128 for lane-dense output stores.
    """
    B, T, E = x.shape
    H = w1.shape[1]
    M = B * T
    bpe = jnp.dtype(x.dtype).itemsize
    budget = _vmem_budget_bytes()

    # ---- choose execution path and tiles ---------------------------------
    fixed = 2 * (E * H + H + H * E + E) * bpe       # resident weight footprint
    per_row = 4 * E * bpe + H * (4 + bpe)           # per-row VMEM cost (resident)
    res_cap = (budget - fixed) // per_row if fixed < budget else 0

    if weight_resident is None:
        weight_resident = (res_cap >= 8) and th is None

    if weight_resident:
        tm_ = tm if tm is not None else _pick_row_tile(M, min(1024, int(res_cap)))
        tm_ = max(8, _round_up(tm_, 8))
        vmem_need = _resident_vmem_bytes(tm_, E, H, bpe)
    else:
        th_ = th if th is not None else _pick_hidden_tile(H)
        assert H % th_ == 0, f"hidden tile {th_} must divide H={H}"
        # Streaming intensity ~ 2*tm/bpe flop/byte -> dtype-aware row tile.
        cap = 1024 if bpe <= 2 else 512
        tm_ = tm if tm is not None else _pick_row_tile(M, cap)
        tm_ = max(8, _round_up(tm_, 8))
        while (tm is None and tm_ > 128
               and _stream_vmem_bytes(tm_, th_, E, bpe) > budget):
            tm_ = max(128, _round_up(tm_ // 2, 8))
        vmem_need = _stream_vmem_bytes(tm_, th_, E, bpe)

    # ---- pad rows only when no divisor row tile exists --------------------
    x2 = x.reshape(M, E)
    Mp = _round_up(M, tm_)
    if Mp != M:
        x2 = jnp.pad(x2, ((0, Mp - M), (0, 0)))
    grid0 = Mp // tm_

    vmem_limit = int(min(budget, max(int(vmem_need * 1.25), 4 << 20)))

    if weight_resident:
        cost = pl.CostEstimate(
            flops=4 * M * E * H,
            transcendentals=0,
            bytes_accessed=(2 * M * E + 2 * E * H + H + E) * bpe)
        out = pl.pallas_call(
            ffn_resident_kernel,
            out_shape=jax.ShapeDtypeStruct((Mp, E), x.dtype),
            grid_spec=pltpu.PrefetchScalarGridSpec(
                num_scalar_prefetch=0,
                grid=(grid0,),
                in_specs=[
                    pl.BlockSpec((tm_, E), lambda i: (i, 0)),   # x rows
                    pl.BlockSpec((E, H), lambda i: (0, 0)),     # W1 (resident)
                    pl.BlockSpec((1, H), lambda i: (0, 0)),     # b1 (resident)
                    pl.BlockSpec((H, E), lambda i: (0, 0)),     # W2 (resident)
                    pl.BlockSpec((1, E), lambda i: (0, 0)),     # b2 (resident)
                ],
                out_specs=pl.BlockSpec((tm_, E), lambda i: (i, 0)),
            ),
            compiler_params=pltpu.CompilerParams(
                dimension_semantics=("parallel",),
                vmem_limit_bytes=vmem_limit,
            ),
            cost_estimate=cost,
        )(x2, w1, b1, w2, b2)
    else:
        cost = pl.CostEstimate(
            flops=4 * M * E * H,
            transcendentals=0,
            # Weights are re-streamed once per row tile on this path.
            bytes_accessed=(2 * M * E + grid0 * (2 * E * H + H) + E) * bpe)
        out = pl.pallas_call(
            ffn_stream_kernel,
            out_shape=jax.ShapeDtypeStruct((Mp, E), x.dtype),
            grid_spec=pltpu.PrefetchScalarGridSpec(
                num_scalar_prefetch=0,
                grid=(grid0, H // th_),             # rows parallel, hidden last
                in_specs=[
                    pl.BlockSpec((tm_, E), lambda i, k: (i, 0)),   # x rows
                    pl.BlockSpec((E, th_), lambda i, k: (0, k)),   # W1 slice
                    pl.BlockSpec((1, th_), lambda i, k: (0, k)),   # b1 slice
                    pl.BlockSpec((th_, E), lambda i, k: (k, 0)),   # W2 slice
                    pl.BlockSpec((1, E), lambda i, k: (0, 0)),     # b2
                ],
                out_specs=pl.BlockSpec((tm_, E), lambda i, k: (i, 0)),
                scratch_shapes=[pltpu.VMEM((tm_, E), jnp.float32)],
            ),
            compiler_params=pltpu.CompilerParams(
                dimension_semantics=("parallel", "arbitrary"),
                vmem_limit_bytes=vmem_limit,
            ),
            cost_estimate=cost,
        )(x2, w1, b1, w2, b2)

    return out[:M].reshape(B, T, E)


# ---------------------------------------------------------------------------
# Params / reference / demo
# ---------------------------------------------------------------------------

def init_params(key, embed_size, dtype=jnp.float32):
    """Deterministic params matching nn.Linear shapes.

    PyTorch nn.Linear(in, out): weight (out, in), bias (out,), init
    U(-1/sqrt(in), 1/sqrt(in)). We store the transposed weight (in, out).
    """
    hidden = 4 * embed_size
    k1, k2, k3, k4 = jax.random.split(key, 4)
    bound1 = 1.0 / (embed_size ** 0.5)
    bound2 = 1.0 / (hidden ** 0.5)
    w1 = jax.random.uniform(k1, (embed_size, hidden), dtype, -bound1, bound1)
    b1 = jax.random.uniform(k2, (1, hidden), dtype, -bound1, bound1)
    w2 = jax.random.uniform(k3, (hidden, embed_size), dtype, -bound2, bound2)
    b2 = jax.random.uniform(k4, (1, embed_size), dtype, -bound2, bound2)
    return w1, b1, w2, b2


def _reference(x, w1, b1, w2, b2):
    B, T, E = x.shape
    y = jnp.maximum(x.reshape(-1, E) @ w1 + b1, 0.0) @ w2 + b2
    return y.reshape(B, T, E)


if __name__ == "__main__":
    key = jax.random.PRNGKey(0)
    kx, kp, kx2 = jax.random.split(key, 3)

    # Small demo shape consistent with the module: batch=2, seq=8, embed=64
    # (hidden = 4*64 = 256).  NOTE: E=64 output lanes are demo-only;
    # production E should be a multiple of 128 for lane-dense stores.
    B, T, E = 2, 8, 64
    x = jax.random.normal(kx, (B, T, E), dtype=jnp.float32)
    w1, b1, w2, b2 = init_params(kp, E)

    # Check 1: auto path selection (weight-resident, weights DMA'd once).
    out = feed_forward(x, w1, b1, w2, b2)
    out = jax.block_until_ready(out)
    ref = _reference(x, w1, b1, w2, b2)
    assert out.shape == (B, T, E)
    assert jnp.allclose(out, ref, atol=1e-5, rtol=1e-5)

    # Check 2: force the streaming path with a multi-step hidden axis and an
    # M that is not a multiple of the row tile (exercises padding + f32
    # accumulator init/accumulate/finalize).
    B2, T2 = 3, 7                                   # M = 21
    x2 = jax.random.normal(kx2, (B2, T2, E), dtype=jnp.float32)
    out2 = feed_forward(x2, w1, b1, w2, b2, tm=8, th=128, weight_resident=False)
    out2 = jax.block_until_ready(out2)
    ref2 = _reference(x2, w1, b1, w2, b2)
    assert out2.shape == (B2, T2, E)
    assert jnp.allclose(out2, ref2, atol=1e-5, rtol=1e-5)

    print("KERNEL_OK")
</pallas_src>

<mosaic_0001>
module attributes {stable_mosaic.version = 11 : i64} {
  func.func @ffn_resident_kernel(%arg0: i32, %arg1: memref<8x64xf32, #tpu.memory_space<vmem>>, %arg2: memref<64x256xf32, #tpu.memory_space<vmem>>, %arg3: memref<1x256xf32, #tpu.memory_space<vmem>>, %arg4: memref<256x64xf32, #tpu.memory_space<vmem>>, %arg5: memref<1x64xf32, #tpu.memory_space<vmem>>, %arg6: memref<8x64xf32, #tpu.memory_space<vmem>>) attributes {dimension_semantics = [#tpu.dimension_semantics<parallel>], iteration_bounds = array<i64: 2>, scalar_prefetch = 0 : i64, scratch_operands = 0 : i64, tpu.core_type = #tpu.core_type<tc>, window_params = [{transform_indices = @transform_0, window_bounds = array<i64: 8, 64>}, {pipeline_mode = #tpu.pipeline_mode<synchronous>, transform_indices = @transform_1, window_bounds = array<i64: 64, 256>}, {pipeline_mode = #tpu.pipeline_mode<synchronous>, transform_indices = @transform_2, window_bounds = array<i64: 1, 256>}, {pipeline_mode = #tpu.pipeline_mode<synchronous>, transform_indices = @transform_3, window_bounds = array<i64: 256, 64>}, {pipeline_mode = #tpu.pipeline_mode<synchronous>, transform_indices = @transform_4, window_bounds = array<i64: 1, 64>}, {transform_indices = @transform_5, window_bounds = array<i64: 8, 64>}]} {
    %c0 = arith.constant 0 : index
    %c0_0 = arith.constant 0 : index
    %0 = vector.load %arg1[%c0, %c0_0] : memref<8x64xf32, #tpu.memory_space<vmem>>, vector<8x64xf32>
    %c0_1 = arith.constant 0 : index
    %c0_2 = arith.constant 0 : index
    %1 = vector.load %arg2[%c0_1, %c0_2] : memref<64x256xf32, #tpu.memory_space<vmem>>, vector<64x256xf32>
    %cst = arith.constant dense<0.000000e+00> : vector<8x256xf32>
    %2 = tpu.matmul %0, %1, %cst {dimension_numbers = #tpu.dot_dimension_numbers<[1], [0], [0], [1], [0, 0, 1, 1], [], []>} : vector<8x64xf32>, vector<64x256xf32>, vector<8x256xf32> -> vector<8x256xf32>
    %c0_3 = arith.constant 0 : index
    %c0_4 = arith.constant 0 : index
    %3 = vector.load %arg3[%c0_3, %c0_4] : memref<1x256xf32, #tpu.memory_space<vmem>>, vector<1x256xf32>
    %4 = vector.broadcast %3 : vector<1x256xf32> to vector<8x256xf32>
    %5 = arith.addf %2, %4 : vector<8x256xf32>
    %cst_5 = arith.constant 0.000000e+00 : f32
    %6 = vector.broadcast %cst_5 : f32 to vector<8x256xf32>
    %7 = arith.maximumf %5, %6 : vector<8x256xf32>
    %c0_6 = arith.constant 0 : index
    %c0_7 = arith.constant 0 : index
    %8 = vector.load %arg4[%c0_6, %c0_7] : memref<256x64xf32, #tpu.memory_space<vmem>>, vector<256x64xf32>
    %cst_8 = arith.constant dense<0.000000e+00> : vector<8x64xf32>
    %9 = tpu.matmul %7, %8, %cst_8 {dimension_numbers = #tpu.dot_dimension_numbers<[1], [0], [0], [1], [0, 0, 1, 1], [], []>} : vector<8x256xf32>, vector<256x64xf32>, vector<8x64xf32> -> vector<8x64xf32>
    %c0_9 = arith.constant 0 : index
    %c0_10 = arith.constant 0 : index
    %10 = vector.load %arg5[%c0_9, %c0_10] : memref<1x64xf32, #tpu.memory_space<vmem>>, vector<1x64xf32>
    %11 = vector.broadcast %10 : vector<1x64xf32> to vector<8x64xf32>
    %12 = arith.addf %9, %11 : vector<8x64xf32>
    %c0_11 = arith.constant 0 : index
    %c0_12 = arith.constant 0 : index
    %13 = vector.load %arg6[%c0_11, %c0_12] : memref<8x64xf32, #tpu.memory_space<vmem>>, vector<8x64xf32>
    tpu.vector_store %arg6[%c0_11, %c0_12], %12 {strides = array<i32>} : memref<8x64xf32, #tpu.memory_space<vmem>>, vector<8x64xf32>,
    return
  }
  func.func @transform_0(%arg0: i32) -> (i32, i32) {
    %c0_i32 = arith.constant 0 : i32
    %c0_i32_0 = arith.constant 0 : i32
    return %arg0, %c0_i32 : i32, i32
  }
  func.func @transform_1(%arg0: i32) -> (i32, i32) {
    %c0_i32 = arith.constant 0 : i32
    %c0_i32_0 = arith.constant 0 : i32
    %c0_i32_1 = arith.constant 0 : i32
    return %c0_i32, %c0_i32_0 : i32, i32
  }
  func.func @transform_2(%arg0: i32) -> (i32, i32) {
    %c0_i32 = arith.constant 0 : i32
    %c0_i32_0 = arith.constant 0 : i32
    %c0_i32_1 = arith.constant 0 : i32
    return %c0_i32, %c0_i32_0 : i32, i32
  }
  func.func @transform_3(%arg0: i32) -> (i32, i32) {
    %c0_i32 = arith.constant 0 : i32
    %c0_i32_0 = arith.constant 0 : i32
    %c0_i32_1 = arith.constant 0 : i32
    return %c0_i32, %c0_i32_0 : i32, i32
  }
  func.func @transform_4(%arg0: i32) -> (i32, i32) {
    %c0_i32 = arith.constant 0 : i32
    %c0_i32_0 = arith.constant 0 : i32
    %c0_i32_1 = arith.constant 0 : i32
    return %c0_i32, %c0_i32_0 : i32, i32
  }
  func.func @transform_5(%arg0: i32) -> (i32, i32) {
    %c0_i32 = arith.constant 0 : i32
    %c0_i32_0 = arith.constant 0 : i32
    return %arg0, %c0_i32 : i32, i32
  }
}

</mosaic_0001>

<bundles_post_ra>
// kernel: tpu_custom_call.1
= control target key start
LH: loop header
LB: loop body
LE: loop exit
PB: predicated region body
PF: predicated region fallthrough
CT: control target
= control target key end

     0   :  { %10 = vsyncpa [#allocation3], 0  ;;  %s932_s0 = inlined_call_operand.vmem [shape: f32[16,64], index: 0, kind: input, shape index: {}]   ;;  %s933_s1 = inlined_call_operand.vmem [shape: f32[64,256], index: 1, kind: input, shape index: {}]   ;;  %s934_s2 = inlined_call_operand.vmem [shape: f32[1,256], index: 2, kind: input, shape index: {}]   ;;  %s935_s3 = inlined_call_operand.vmem [shape: f32[256,64], index: 3, kind: input, shape index: {}]   ;;  %s936_s4 = inlined_call_operand.vmem [shape: f32[1,64], index: 4, kind: input, shape index: {}]   ;;  %s937_s5 = inlined_call_operand.hbm [shape: f32[16,64], index: 5, kind: output, shape index: {}]  }
   0x1   :  { %12 = vsyncpa [#allocation3 + $0x1], 0  ;;  %s690_s18 = smov 0   ;;  %s692_s19 = smov 0  }
   0x2   :  { %s694_s20 = smov 0   ;;  %s696_s21 = smov 0  }
   0x3 LB: > { %s711_s22 = sadd.s32 4294967295, %s656_s21   ;;  %s509_s23 = sadd.s32 4294967294, %s656_s21   ;;  %s656_s21 = sphi %s696_s21, %s943_s21   ;;  %s652_s20 = sphi %s694_s20, %s942_s20   ;;  %s648_s19 = sphi %s692_s19, %s941_s19   ;;  %s644_s18 = sphi %s690_s18, %s940_s18  }
   0x4   : > { %s715_s24 = sadd.s32 1, %s656_s21   ;;  %s135_s25 = sadd.s32 1, %s652_s20 }
   0x5   : > { %s132_s26 = ssub.s32 %s656_s21, %s715_s24  ;;  %p145_p0 = scmp.ne.s32.totalorder %s652_s20, %s648_s19 }
   0x6   : > { %p133_p1 = scmp.eq.s32.totalorder %s132_s26, 0  ;;  %p146_p2 = scmp.eq.s32.totalorder %s711_s22, 1 }
   0x7   : > { %p151_p3 = scmp.ne.s32.totalorder %s648_s19, %s644_s18  ;;  %p152_p4 = scmp.eq.s32.totalorder %s509_s23, 1 }
   0x8   : > { %s726_s27 = scalar_select %p133_p1, %s652_s20, %s135_s25  }
   0x9   : > { %p728_p5 = por %p146_p2, %p145_p0  ;;  %p732_p6 = por %p152_p4, %p151_p3 }
   0xa   : > { %p512_p7 = scmp.ge.s32.totalorder %s656_s21, 1  ;;  %p189_p8 = scmp.lt.s32.totalorder %s656_s21, 3 }
   0xc   : > { %p190_p9 = pnand %p512_p7, %p189_p8 }
   0xd   : > { %p216_p10 = scmp.lt.s32.totalorder (!%p190_p9), %s711_s22, 1  ;;  %s213_s14 = sand.u32 (!%p190_p9), 1, %s648_s19  }
   0xe   : > { %193 = sbr.rel (%p190_p9) target bundleno = 448 (0x1c0), region = 40  ;;  %s513_s15 = sshll.u32 (!%p190_p9), %s213_s14, 3 }
   0xf   : > { %s518_s16 = sshll.u32 (!%p190_p9), %s711_s22, 7  ;;  %s215_s17 = scalar_lea.vmem (!%p190_p9), [#allocation2], %s513_s15 }
  0x10   : > { %s450_s23 = sshll.u32 (!%p190_p9), %s215_s17, 4  ;;  %s448_s8 = scalar_lea.hbm (!%p190_p9), %s937_s5, %s518_s16  ;;  %s451_s23 = int_to_ptr.vmem [resolvable:$true] %s450_s23 }
  0x11   : > { %s596_s9 = scalar_lea.vmem (!%p190_p9), %s451_s23, 128  ;;  %s659_s10 = smov (!%p190_p9), [#allocation2]  }
  0x12   : > { %p597_p11 = scmp.ne.s32.totalorder (!%p190_p9), %s451_s23, %s596_s9  ;;  %s600_s11 = sshll.u32 (!%p190_p9), %s659_s10, 4  ;;  %s601_s11 = int_to_ptr.vmem [resolvable:$false] %s600_s11 }
  0x13   : > { %v236_v0 = vld [vmem:[%s933_s1 + $0x78] sm:$0xff]  ;;  %v235_v1 = vld [vmem:[%s933_s1 + $0x70] sm:$0xff]  ;;  %v234_v2 = vld [vmem:[%s933_s1 + $0x68] sm:$0xff]  ;;  %v658_v4 = vmov 0.0   ;;  %s761_s25 = scalar_select %p216_p10, %s711_s22, 1  ;;  %vm249_vm0 = vcmask 523264   ;;  %v239_v50 = vlaneseq }
  0x14   : > { %269 = vmatprep.subr.mxu0 %v236_v0  ;;  %v233_v3 = vld [vmem:[%s933_s1 + $0x60] sm:$0xff]  ;;  %317 = vmatprep.mubr.f32.mxu0 %v658_v4  ;;  %v232_v5 = vld [vmem:[%s933_s1 + $0x58] sm:$0xff]  ;;  %v231_v6 = vld [vmem:[%s933_s1 + $0x50] sm:$0xff]  ;;  %p598_p12 = pnand %p597_p11, %p728_p5  ;;  %s602_s22 = scalar_lea.vmem %s601_s11, 256 }
  0x15   : > { %270 = vmatpush1.msra.mxu0 %v235_v1  ;;  %v230_v7 = vld [vmem:[%s933_s1 + $0x48] sm:$0xff]  ;;  %v229_v8 = vld [vmem:[%s933_s1 + $0x40] sm:$0xff]  ;;  %v357_v9 = vld [vmem:[%s935_s3 + $0xf8] sm:$0xff]  ;;  %s514_s7 = sshll.u32 %s761_s25, 3  ;;  %v240_v51 = vshrl.u32 %v239_v50, 7  ;;  %p603_p0 = scmp.lt.s32.totalorder %s451_s23, %s601_s11 }
  0x16   : > { %271 = vmatprep.subr.mxu0 %v234_v2  ;;  %v341_v10 = vld [vmem:[%s935_s3 + $0x78] sm:$0xff]  ;;  %521 = vmatprep.subr.mxu1 %v357_v9  ;;  %v356_v12 = vld [vmem:[%s935_s3 + $0xf0] sm:$0xff]  ;;  %v355_v15 = vld [vmem:[%s935_s3 + $0xe8] sm:$0xff]  ;;  %s219_s6 = scalar_lea.vmem %s932_s0, %s514_s7  ;;  %p599_p13 = pneg %p598_p12 }
  0x17   : > { %272 = vmatpush1.msra.mxu0 %v233_v3  ;;  %v228_v11 = vld [vmem:[%s933_s1 + $0x38] sm:$0xff]  ;;  %v340_v13 = vld [vmem:[%s935_s3 + $0x70] sm:$0xff]  ;;  %522 = vmatpush3.msra.mxu1 %v341_v10  ;;  %v226_v16 = vld [vmem:[%s933_s1 + $0x28] sm:$0xff]  ;;  %v241_v52 = vsub.s32 0, %v240_v51  ;;  %v245_v54 = vsub.s32 1, %v240_v51  ;;  %p604_p1 = scmp.lt.s32.totalorder %s602_s22, %s596_s9 }
  0x18   : > { %273 = vmatprep.subr.mxu0 %v232_v5  ;;  %v227_v14 = vld [vmem:[%s933_s1 + $0x30] sm:$0xff]  ;;  %523 = vmatprep.subr.mxu1 %v356_v12  ;;  %v339_v17 = vld [vmem:[%s935_s3 + $0x68] sm:$0xff]  ;;  %v225_v18 = vld [vmem:[%s933_s1 + $0x20] sm:$0xff] }
  0x19   : > { %274 = vmatpush1.msra.mxu0 %v231_v6  ;;  %524 = vmatpush3.msra.mxu1 %v340_v13  ;;  %v354_v19 = vld [vmem:[%s935_s3 + $0xe0] sm:$0xff]  ;;  %v224_v20 = vld [vmem:[%s933_s1 + $0x18] sm:$0xff]  ;;  %v223_v22 = vld [vmem:[%s933_s1 + $0x10] sm:$0xff]  ;;  %p605_p2 = por %p604_p1, %p603_p0 }
  0x1a   : > { %275 = vmatprep.subr.mxu0 %v230_v7  ;;  %525 = vmatprep.subr.mxu1 %v355_v15  ;;  %v338_v21 = vld [vmem:[%s935_s3 + $0x60] sm:$0xff]  ;;  %v353_v23 = vld [vmem:[%s935_s3 + $0xd8] sm:$0xff]  ;;  %v222_v24 = vld [vmem:[%s933_s1 + $0x8] sm:$0xff] }
  0x1b   : > { %276 = vmatpush1.msra.mxu0 %v229_v8  ;;  %526 = vmatpush3.msra.mxu1 %v339_v17  ;;  %v337_v25 = vld [vmem:[%s935_s3 + $0x58] sm:$0xff]  ;;  %v221_v26 = vld [vmem:[%s933_s1] sm:$0xff]  ;;  %v352_v27 = vld [vmem:[%s935_s3 + $0xd0] sm:$0xff]  ;;  %p606_p3 = pnand %p605_p2, %p599_p13 }
  0x1c   : > { %277 = vmatprep.subr.mxu0 %v228_v11  ;;  %527 = vmatprep.subr.mxu1 %v354_v19  ;;  %v220_v28 = vld [vmem:[%s219_s6] sm:$0xff]  ;;  %v336_v29 = vld [vmem:[%s935_s3 + $0x50] sm:$0xff]  ;;  %v351_v30 = vld [vmem:[%s935_s3 + $0xc8] sm:$0xff]  ;;  %s437_s6 = scalar_lea.sflag [#allocation3], %s213_s14 }
  0x1d   : > { %278 = vmatpush1.msra.mxu0 %v227_v14  ;;  %528 = vmatpush3.msra.mxu1 %v338_v21  ;;  %v335_v31 = vld [vmem:[%s935_s3 + $0x48] sm:$0xff]  ;;  %v350_v32 = vld [vmem:[%s935_s3 + $0xc0] sm:$0xff]  ;;  %v349_v34 = vld [vmem:[%s935_s3 + $0xb8] sm:$0xff] }
  0x1e   : > { %279 = vmatprep.subr.mxu0 %v226_v16  ;;  %529 = vmatprep.subr.mxu1 %v353_v23  ;;  %v334_v33 = vld [vmem:[%s935_s3 + $0x40] sm:$0xff]  ;;  %v333_v35 = vld [vmem:[%s935_s3 + $0x38] sm:$0xff]  ;;  %v348_v36 = vld [vmem:[%s935_s3 + $0xb0] sm:$0xff] }
  0x1f   : > { %280 = vmatpush1.msra.mxu0 %v225_v18  ;;  %530 = vmatpush3.msra.mxu1 %v337_v25  ;;  %v332_v37 = vld [vmem:[%s935_s3 + $0x30] sm:$0xff]  ;;  %v347_v38 = vld [vmem:[%s935_s3 + $0xa8] sm:$0xff]  ;;  %v346_v40 = vld [vmem:[%s935_s3 + $0xa0] sm:$0xff] }
  0x20   : > { %281 = vmatprep.subr.mxu0 %v224_v20  ;;  %531 = vmatprep.subr.mxu1 %v352_v27  ;;  %v331_v39 = vld [vmem:[%s935_s3 + $0x28] sm:$0xff]  ;;  %v330_v41 = vld [vmem:[%s935_s3 + $0x20] sm:$0xff]  ;;  %v345_v42 = vld [vmem:[%s935_s3 + $0x98] sm:$0xff] }
  0x21   : > { %282 = vmatpush1.msra.mxu0 %v223_v22  ;;  %532 = vmatpush3.msra.mxu1 %v336_v29  ;;  %v329_v43 = vld [vmem:[%s935_s3 + $0x18] sm:$0xff]  ;;  %v344_v44 = vld [vmem:[%s935_s3 + $0x90] sm:$0xff]  ;;  %v343_v46 = vld [vmem:[%s935_s3 + $0x88] sm:$0xff] }
  0x22   : > { %283 = vmatprep.subr.mxu0 %v222_v24  ;;  %533 = vmatprep.subr.mxu1 %v351_v30  ;;  %v328_v45 = vld [vmem:[%s935_s3 + $0x10] sm:$0xff]  ;;  %v327_v47 = vld [vmem:[%s935_s3 + $0x8] sm:$0xff]  ;;  %v342_v48 = vld [vmem:[%s935_s3 + $0x80] sm:$0xff] }
  0x23   : > { %284 = vmatpush1.msra.mxu0 %v221_v26  ;;  %534 = vmatpush3.msra.mxu1 %v335_v31  ;;  %v326_v49 = vld [vmem:[%s935_s3] sm:$0xff] }
  0x24   : > { %515 = vmatmul.mubr.msk.f32.vlgmr.msra.gmra.mxu0 %vm249_vm0, %v220_v28  ;;  %535 = vmatprep.subr.mxu1 %v350_v32  ;;  %v237_v53 = vld [vmem:[%s934_s2] sm:$0x3] }
  0x25   : > { %536 = vmatpush3.msra.mxu1 %v334_v33  ;;  %v242_v55 = vrot.slane %v237_v53, %v241_v52  ;;  %v246_v56 = vrot.slane %v237_v53, %v245_v54  ;;  %v516_v0 = vld [vmem:[%s936_s4] ss:$0 sm:$0xff] }
  0x26   : > { %537 = vmatprep.subr.mxu1 %v349_v34 }
  0x27   : > { %538 = vmatpush3.msra.mxu1 %v333_v35 }
  0x28   : > { %539 = vmatprep.subr.mxu1 %v348_v36 }
  0x29   : > { %540 = vmatpush3.msra.mxu1 %v332_v37 }
  0x2a   : > { %541 = vmatprep.subr.mxu1 %v347_v38 }
  0x2b   : > { %542 = vmatpush3.msra.mxu1 %v331_v39 }
  0x2c   : > { %543 = vmatprep.subr.mxu1 %v346_v40 }
  0x2d   : > { %544 = vmatpush3.msra.mxu1 %v330_v41 }
  0x2e   : > { %545 = vmatprep.subr.mxu1 %v345_v42 }
  0x2f   : > { %546 = vmatpush3.msra.mxu1 %v329_v43 }
  0x30   : > { %547 = vmatprep.subr.mxu1 %v344_v44 }
  0x31   : > { %548 = vmatpush3.msra.mxu1 %v328_v45 }
  0x32   : > { %549 = vmatprep.subr.mxu1 %v343_v46 }
  0x33   : > { %550 = vmatpush3.msra.mxu1 %v327_v47 }
  0x34   : > { %551 = vmatprep.subr.mxu1 %v342_v48 }
  0x35   : > { %552 = vmatpush3.msra.mxu1 %v326_v49 }
  0xe4   : > { %v319_v57 = vpop.f32.mrf.mxu0 }
  0xe5   : > { %v320_v58 = vadd.f32 %v319_v57, %v242_v55 }
  0xe6   : > { %v321_v59 = vpop.f32.mrf.mxu0 }
  0xe7   : > { %v322_v60 = vadd.f32 %v321_v59, %v246_v56  ;;  %v324_v62 = vmax.f32 %v320_v58, 0.0 }
  0xe9   : > { %v325_v61 = vmax.f32 %v322_v60, 0.0 }
  0xeb   : > { %429 = vmatprep.mubr.f32.mxu1 %v325_v61 }
  0xec   : > { %430 = vmatmul.mubr.f32.vlgmr.msra.gmra.mxu1 %v324_v62 }
 0x1ac   : > { %v553_v63 = vpop.f32.mrf.mxu1 }
 0x1ae   : > { %v554_v1 = vpop.f32.mrf.mxu1 }
 0x1af   : > { %v555_v2 = vadd.f32 %v554_v1, %v553_v63 }
 0x1b1   : > { %v432_v3 = vadd.f32 %v555_v2, %v516_v0 }
 0x1b3   : > { %435 = vst.msk [vmem:[%s215_s17] sm:$0xff] %vm249_vm0, %v432_v3 }
 0x1b4   : > { %609 = shalt.err (!%p606_p3)
}
 0x1b5   : > { %s610_s12 = scalar_lea.hbm %s448_s8, 128  ;;  %s614_s15 = scalar_lea.hbm %s937_s5, 256 }
 0x1b6   : > { %p611_p4 = scmp.ne.s32.totalorder %s448_s8, %s610_s12  ;;  %p615_p9 = scmp.lt.s32.totalorder %s448_s8, %s937_s5 }
 0x1b7   : > { %p616_p10 = scmp.lt.s32.totalorder %s614_s15, %s610_s12 }
 0x1b8   : > { %p612_p7 = pnand %p611_p4, %p728_p5 }
 0x1b9   : > { %p617_p11 = por %p616_p10, %p615_p9 }
 0x1ba   : > { %p613_p8 = pneg %p612_p7 }
 0x1bc   : > { %p618_p12 = pnand %p617_p11, %p613_p8 }
 0x1be   : > { %621 = shalt.err (!%p618_p12)
}
 0x1bf   : > { %556 = dma.vmem_to_hbm [thread:$0]  (%p728_p5), %s451_s23, 128, %s448_s8, %s437_s6  }
 0x1c0 PF: > { %p562_p13 = scmp.ge.s32.totalorder %s656_s21, 2  ;;  %s462_s16 = sand.u32 1, %s644_s18  }
 0x1c1   : > { %s463_s17 = scalar_lea.sflag [#allocation3], %s462_s16 }
 0x1c2   : > { %p559_p0 = pnand %p562_p13, %p732_p6 }
 0x1c4   : > { %p560_p1 = pneg %p559_p0 }
 0x1c6   : > { %639 = dma.done.wait (%p560_p1), %s463_s17, 128  }
 0x1c7   : > { %641 = vsyncadd (%p560_p1), %s463_s17, 4294967168  ;;  %p15_p2 = scmp.ge.s32.totalorder %s715_s24, 4   ;;  %s940_s18 = smov %s648_s19 }
 0x1c8   : > { %s941_s19 = smov %s652_s20  ;;  %s942_s20 = smov %s726_s27 }
 0x1c9   : > { %s943_s21 = smov %s715_s24  ;;  %17 = sbr.rel (!%p15_p2) target bundleno = 3 (0x3), region = 75 }
 0x1ce   :  { %468 = vsyncpa [#allocation3], 1 }
 0x1cf   :  { %470 = vsyncpa [#allocation3 + $0x1], 1 }

</bundles_post_ra>
